<compile_context>
chip_gen: v7x
topology: tpu7x:2x2x1
jax: 0.10.0
libtpu: 0.0.40
codegen_flags: <defaults>
</compile_context>

<pallas_src>
import math
import functools

import numpy as np
import jax
import jax.numpy as jnp
from jax.experimental import pallas as pl
from jax.experimental.pallas import tpu as pltpu


_SQRT_2_OVER_PI = math.sqrt(2.0 / math.pi)


def _gelu_tanh_f32(b):
    # Matches torch.nn.functional.gelu(..., approximate='tanh').
    inner = _SQRT_2_OVER_PI * (b + 0.044715 * (b * b * b))
    return 0.5 * b * (1.0 + jnp.tanh(inner))


def _geglu_split_kernel(a_ref, b_ref, o_ref):
    # a/b halves arrive as separate lane-aligned blocks — no in-kernel slicing.
    g = _gelu_tanh_f32(b_ref[...].astype(jnp.float32))
    o_ref[...] = (a_ref[...].astype(jnp.float32) * g).astype(o_ref.dtype)


def _geglu_fused_kernel(x_ref, o_ref):
    # Fallback when H is not a multiple of 128: one [rows, 2H] block.
    h = o_ref.shape[-1]
    g = _gelu_tanh_f32(x_ref[:, h:].astype(jnp.float32))
    o_ref[...] = (x_ref[:, :h].astype(jnp.float32) * g).astype(o_ref.dtype)


def _round_up(v, m):
    return (v + m - 1) // m * m


@functools.partial(jax.jit, static_argnames=("dim",))
def geglu(x, dim: int = -1):
    """GeGLU: split x in half along `dim`, return first_half * gelu_tanh(second_half)."""
    ndim = x.ndim
    dim = dim % ndim

    # Static permutation (pure Python/NumPy — safe under jit tracing).
    # TODO(synk): for dim != last this costs two extra HBM passes (transpose
    # in/out); keep the split axis last in the caller when possible.
    perm = tuple(i for i in range(ndim) if i != dim) + (dim,)
    inv_perm = tuple(int(p) for p in np.argsort(perm))
    xt = x if dim == ndim - 1 else jnp.transpose(x, perm)

    *lead, two_h = xt.shape
    assert two_h % 2 == 0, "split axis must have even size"
    h = two_h // 2
    m = math.prod(lead) if lead else 1
    x2d = xt.reshape(m, two_h)

    itemsize = jnp.dtype(x.dtype).itemsize
    sublane = max(8, 32 // itemsize)  # 8 for f32, 16 for bf16, 32 for int8/fp8

    # Live VMEM with double buffering ~= 2*(a blk) + 2*(b blk) + 2*(out blk).
    # Budget ~24 MiB so large tiles fit v7x (64 MiB physical) with headroom.
    budget = 24 * 1024 * 1024
    per_row = 6 * h * max(itemsize, 4)
    rows = max(sublane, min(1024, budget // max(per_row, 1)))
    rows = max(sublane, (rows // sublane) * sublane)
    rows = min(rows, _round_up(m, sublane))  # don't over-allocate for tiny inputs

    grid = (pl.cdiv(m, rows),)  # ragged last block handled by Pallas — no jnp.pad
    compiler_params = pltpu.CompilerParams(
        dimension_semantics=("parallel",),
        vmem_limit_bytes=48 * 1024 * 1024,
    )
    out_shape = jax.ShapeDtypeStruct((m, h), x.dtype)

    if h % 128 == 0:
        # Fast path: lane-aligned halves as two independent input blocks.
        out2d = pl.pallas_call(
            _geglu_split_kernel,
            out_shape=out_shape,
            grid_spec=pltpu.PrefetchScalarGridSpec(
                num_scalar_prefetch=0,
                grid=grid,
                in_specs=[
                    pl.BlockSpec((rows, h), lambda i: (i, 0)),  # a half
                    pl.BlockSpec((rows, h), lambda i: (i, 1)),  # b half
                ],
                out_specs=pl.BlockSpec((rows, h), lambda i: (i, 0)),
            ),
            compiler_params=compiler_params,
        )(x2d, x2d)
    else:
        # Fallback: full [rows, 2H] block, slice in kernel (masked-store path).
        out2d = pl.pallas_call(
            _geglu_fused_kernel,
            out_shape=out_shape,
            grid_spec=pltpu.PrefetchScalarGridSpec(
                num_scalar_prefetch=0,
                grid=grid,
                in_specs=[pl.BlockSpec((rows, two_h), lambda i: (i, 0))],
                out_specs=pl.BlockSpec((rows, h), lambda i: (i, 0)),
            ),
            compiler_params=compiler_params,
        )(x2d)

    out_t = out2d.reshape(*lead, h)
    return out_t if dim == ndim - 1 else jnp.transpose(out_t, inv_perm)


def _geglu_ref(x, dim=-1):
    a, b = jnp.split(x, 2, axis=dim)
    return a * (0.5 * b * (1.0 + jnp.tanh(_SQRT_2_OVER_PI * (b + 0.044715 * b ** 3))))


if __name__ == "__main__":
    key = jax.random.PRNGKey(0)

    # Case 1: split along the last axis, lane-aligned hidden (H=128).
    x = jax.random.normal(key, (2, 8, 256), dtype=jnp.float32)
    out = geglu(x, dim=-1)
    jax.block_until_ready(out)
    ref = _geglu_ref(x, dim=-1)
    assert out.shape == ref.shape, (out.shape, ref.shape)
    assert jnp.allclose(out, ref, atol=1e-5, rtol=1e-5), "mismatch vs reference (dim=-1)"

    # Case 2: split along a non-last axis (exercises the transpose glue path).
    x2 = jax.random.normal(jax.random.PRNGKey(1), (2, 256, 8), dtype=jnp.float32)
    out2 = geglu(x2, dim=1)
    jax.block_until_ready(out2)
    ref2 = _geglu_ref(x2, dim=1)
    assert out2.shape == ref2.shape, (out2.shape, ref2.shape)
    assert jnp.allclose(out2, ref2, atol=1e-5, rtol=1e-5), "mismatch vs reference (dim=1)"

    print("KERNEL_OK")
</pallas_src>

<mosaic_0001>
module attributes {stable_mosaic.version = 11 : i64} {
  func.func @_geglu_split_kernel(%arg0: i32, %arg1: memref<16x128xf32, #tpu.memory_space<vmem>>, %arg2: memref<16x128xf32, #tpu.memory_space<vmem>>, %arg3: memref<16x128xf32, #tpu.memory_space<vmem>>) attributes {dimension_semantics = [#tpu.dimension_semantics<parallel>], iteration_bounds = array<i64: 1>, scalar_prefetch = 0 : i64, scratch_operands = 0 : i64, tpu.core_type = #tpu.core_type<tc>, window_params = [{transform_indices = @transform_0, window_bounds = array<i64: 16, 128>}, {transform_indices = @transform_1, window_bounds = array<i64: 16, 128>}, {transform_indices = @transform_2, window_bounds = array<i64: 16, 128>}]} {
    %c0 = arith.constant 0 : index
    %c0_0 = arith.constant 0 : index
    %0 = vector.load %arg2[%c0, %c0_0] : memref<16x128xf32, #tpu.memory_space<vmem>>, vector<16x128xf32>
    %1 = arith.mulf %0, %0 : vector<16x128xf32>
    %2 = arith.mulf %1, %0 : vector<16x128xf32>
    %cst = arith.constant 4.471500e-02 : f32
    %3 = vector.broadcast %cst : f32 to vector<16x128xf32>
    %4 = arith.mulf %3, %2 : vector<16x128xf32>
    %5 = arith.addf %0, %4 : vector<16x128xf32>
    %cst_1 = arith.constant 0.797884583 : f32
    %6 = vector.broadcast %cst_1 : f32 to vector<16x128xf32>
    %7 = arith.mulf %6, %5 : vector<16x128xf32>
    %cst_2 = arith.constant 5.000000e-01 : f32
    %8 = vector.broadcast %cst_2 : f32 to vector<16x128xf32>
    %9 = arith.mulf %8, %0 : vector<16x128xf32>
    %10 = math.tanh %7 : vector<16x128xf32>
    %cst_3 = arith.constant 1.000000e+00 : f32
    %11 = vector.broadcast %cst_3 : f32 to vector<16x128xf32>
    %12 = arith.addf %11, %10 : vector<16x128xf32>
    %13 = arith.mulf %9, %12 : vector<16x128xf32>
    %c0_4 = arith.constant 0 : index
    %c0_5 = arith.constant 0 : index
    %14 = vector.load %arg1[%c0_4, %c0_5] : memref<16x128xf32, #tpu.memory_space<vmem>>, vector<16x128xf32>
    %15 = arith.mulf %14, %13 : vector<16x128xf32>
    %c0_6 = arith.constant 0 : index
    %c0_7 = arith.constant 0 : index
    %16 = vector.load %arg3[%c0_6, %c0_7] : memref<16x128xf32, #tpu.memory_space<vmem>>, vector<16x128xf32>
    tpu.vector_store %arg3[%c0_6, %c0_7], %15 {strides = array<i32>} : memref<16x128xf32, #tpu.memory_space<vmem>>, vector<16x128xf32>,
    return
  }
  func.func @transform_0(%arg0: i32) -> (i32, i32) {
    %c0_i32 = arith.constant 0 : i32
    %c0_i32_0 = arith.constant 0 : i32
    return %arg0, %c0_i32 : i32, i32
  }
  func.func @transform_1(%arg0: i32) -> (i32, i32) {
    %c1_i32 = arith.constant 1 : i32
    %c0_i32 = arith.constant 0 : i32
    return %arg0, %c1_i32 : i32, i32
  }
  func.func @transform_2(%arg0: i32) -> (i32, i32) {
    %c0_i32 = arith.constant 0 : i32
    %c0_i32_0 = arith.constant 0 : i32
    return %arg0, %c0_i32 : i32, i32
  }
}

</mosaic_0001>

<bundles_post_ra>
// kernel: geglu.1
= control target key start
LH: loop header
LB: loop body
LE: loop exit
PB: predicated region body
PF: predicated region fallthrough
CT: control target
= control target key end

     0   :  { %7 = vsyncpa [#allocation3], 0  ;;  %s237_s0 = inlined_call_operand.hbm [shape: f32[16,256], index: 0, kind: input, shape index: {}, may-alias: {0,1}]   ;;  %s238_s1 = inlined_call_operand.hbm [shape: f32[16,256], index: 1, kind: input, shape index: {}, may-alias: {0,1}]   ;;  %s239_s2 = inlined_call_operand.hbm [shape: f32[16,128], index: 2, kind: output, shape index: {}]  }
   0x1   :  { %8 = vsyncpa [#allocation6], 0 }
   0x2   :  { %9 = vsyncpa [#allocation4], 0  ;;  %s170_s9 = smov [#allocation2]   ;;  %s95_s13 = scalar_lea.hbm %s237_s0, 256 }
   0x3   :  { %s15_s10 = sshll.u32 %s170_s9, 4  ;;  %p96_p0 = scmp.ne.s32.totalorder %s237_s0, %s95_s13  ;;  %s16_s10 = int_to_ptr.vmem [resolvable:$true] %s15_s10 }
   0x4   :  { %s97_s18 = scalar_lea.hbm %s237_s0, 512  ;;  %p99_p2 = scmp.lt.u32.totalorder %s95_s13, %s237_s0 }
   0x5   :  { %p98_p1 = scmp.lt.u32.totalorder %s97_s18, %s95_s13 }
   0x7   :  { %p100_p3 = por %p99_p2, %p98_p1 }
   0x9   :  { %p101_p4 = pnand %p100_p3, %p96_p0 }
   0xb   :  { %104 = shalt.err (!%p101_p4)
}
   0xc   :  { %s105_s21 = scalar_lea.vmem %s16_s10, 256  ;;  %p110_p6 = scmp.lt.s32.totalorder %s16_s10, %s16_s10 }
   0xd   :  { %p106_p5 = scmp.ne.s32.totalorder %s16_s10, %s105_s21  ;;  %p111_p7 = scmp.lt.s32.totalorder %s105_s21, %s105_s21 }
   0xf   :  { %p112_p8 = por %p111_p7, %p110_p6 }
  0x11   :  { %p113_p9 = pnand %p112_p8, %p106_p5 }
  0x13   :  { %116 = shalt.err (!%p113_p9)
}
  0x14   :  { %s171_s22 = smov 256   ;;  %s172_s23 = smov 128  }
  0x15   :  { %s173_s24 = smov 8   ;;  %s27_s29 = scalar_lea.hbm %s238_s1, 128 }
  0x16   :  { %21 = dma.hbm_to_vmem [thread:$0]  %s237_s0, 256, %s16_s10, [#allocation3], %s171_s22, %s172_s23, %s173_s24  }
  0x17   :  { %s174_s30 = smov [#allocation5]   ;;  %s141_s6 = scalar_lea.hbm %s238_s1, 384 }
  0x18   :  { %s28_s3 = sshll.u32 %s174_s30, 4  ;;  %p118_p10 = scmp.ne.s32.totalorder %s27_s29, %s141_s6  ;;  %s29_s3 = int_to_ptr.vmem [resolvable:$true] %s28_s3 }
  0x19   :  { %s119_s9 = scalar_lea.hbm %s238_s1, 512  ;;  %p120_p11 = scmp.lt.u32.totalorder %s27_s29, %s238_s1 }
  0x1a   :  { %p121_p12 = scmp.lt.u32.totalorder %s119_s9, %s141_s6  ;;  %p123_p0 = scmp.lt.u32.totalorder %s141_s6, %s27_s29 }
  0x1c   :  { %p122_p13 = por %p121_p12, %p120_p11 }
  0x1e   :  { %p124_p1 = por %p123_p0, %p122_p13 }
  0x20   :  { %p125_p2 = pnand %p124_p1, %p118_p10 }
  0x22   :  { %128 = shalt.err (!%p125_p2)
}
  0x23   :  { %s129_s0 = scalar_lea.vmem %s29_s3, 256  ;;  %p134_p4 = scmp.lt.s32.totalorder %s29_s3, %s29_s3 }
  0x24   :  { %p130_p3 = scmp.ne.s32.totalorder %s29_s3, %s129_s0  ;;  %p135_p5 = scmp.lt.s32.totalorder %s129_s0, %s129_s0 }
  0x26   :  { %p136_p6 = por %p135_p5, %p134_p4 }
  0x28   :  { %p137_p7 = pnand %p136_p6, %p130_p3 }
  0x2a   :  { %140 = shalt.err (!%p137_p7)
}
  0x2b   :  { %34 = dma.hbm_to_vmem [thread:$0]  %s27_s29, 256, %s29_s3, [#allocation6], %s171_s22, %s172_s23, %s173_s24  }
  0x2c   :  { %164 = dma.done.wait [#allocation3], 256  }
  0x2d   :  { %165 = vsyncadd [#allocation3], 4294967040 }
  0x2e   :  { %166 = dma.done.wait [#allocation6], 256  }
  0x2f   :  { %167 = vsyncadd [#allocation6], 4294967040  ;;  %v41_v0 = vld [vmem:[#allocation5] sm:$0xff]  ;;  %v42_v1 = vld [vmem:[#allocation5 + $0x8] sm:$0xff]  ;;  %s175_s1 = smov [#allocation7]  }
  0x30   :  { %v43_v2 = vmul.f32 %v41_v0, %v41_v0  ;;  %v44_v3 = vmul.f32 %v42_v1, %v42_v1  ;;  %v53_v12 = vmul.f32 0.5, %v41_v0  ;;  %v54_v14 = vmul.f32 0.5, %v42_v1  ;;  %v61_v17 = vld [vmem:[#allocation2] sm:$0xff]  ;;  %v62_v20 = vld [vmem:[#allocation2 + $0x8] sm:$0xff]  ;;  %s72_s10 = sshll.u32 %s175_s1, 4  ;;  %s73_s10 = int_to_ptr.vmem [resolvable:$true] %s72_s10 }
  0x31   :  { %s142_s13 = scalar_lea.vmem %s73_s10, 256  ;;  %p147_p9 = scmp.lt.s32.totalorder %s73_s10, %s73_s10 }
  0x32   :  { %v45_v4 = vmul.f32 %v43_v2, %v41_v0  ;;  %v46_v5 = vmul.f32 %v44_v3, %v42_v1  ;;  %p143_p8 = scmp.ne.s32.totalorder %s73_s10, %s142_s13  ;;  %p148_p10 = scmp.lt.s32.totalorder %s142_s13, %s142_s13 }
  0x34   :  { %v47_v6 = vmul.f32 0.044715, %v45_v4  ;;  %v48_v7 = vmul.f32 0.044715, %v46_v5  ;;  %p149_p11 = por %p148_p10, %p147_p9 }
  0x36   :  { %v49_v8 = vadd.f32 %v47_v6, %v41_v0  ;;  %v50_v9 = vadd.f32 %v48_v7, %v42_v1  ;;  %p150_p12 = pnand %p149_p11, %p143_p8 }
  0x38   :  { %v51_v10 = vmul.f32 0.7978846, %v49_v8  ;;  %v52_v11 = vmul.f32 0.7978846, %v50_v9 }
  0x3a   :  { %91 = vtanh.f32 %v51_v10 }
  0x3b   :  { %93 = vtanh.f32 %v52_v11 }
  0x44   :  { %v92_v13 = vpop.eup %91 }
  0x45   :  { %v94_v15 = vpop.eup %93  ;;  %v57_v16 = vadd.f32 1.0, %v92_v13 }
  0x46   :  { %v58_v18 = vadd.f32 1.0, %v94_v15 }
  0x47   :  { %v59_v19 = vmul.f32 %v57_v16, %v53_v12 }
  0x48   :  { %v60_v21 = vmul.f32 %v58_v18, %v54_v14 }
  0x49   :  { %v63_v22 = vmul.f32 %v61_v17, %v59_v19 }
  0x4a   :  { %v64_v23 = vmul.f32 %v62_v20, %v60_v21 }
  0x4b   :  { %65 = vst [vmem:[#allocation7] sm:$0xff] %v63_v22 }
  0x4c   :  { %66 = vst [vmem:[#allocation7 + $0x8] sm:$0xff] %v64_v23 }
  0x4d   :  { %153 = shalt.err (!%p150_p12)
}
  0x4e   :  { %s154_s16 = scalar_lea.hbm %s239_s2, 256 }
  0x4f   :  { %p155_p13 = scmp.ne.s32.totalorder %s239_s2, %s154_s16  ;;  %p158_p0 = scmp.lt.u32.totalorder %s154_s16, %s239_s2 }
  0x51   :  { %p160_p1 = pnand %p158_p0, %p155_p13 }
  0x53   :  { %163 = shalt.err (!%p160_p1)
}
  0x54   :  { %78 = dma.vmem_to_hbm [thread:$0]  %s73_s10, 256, %s239_s2, [#allocation4], %s172_s23, %s172_s23, %s173_s24  }
  0x55   :  { %168 = dma.done.wait [#allocation4], 256  }
  0x56   :  { %169 = vsyncadd [#allocation4], 4294967040 }
  0x57   :  { %82 = vsyncpa [#allocation3], 1 }
  0x58   :  { %83 = vsyncpa [#allocation6], 1 }
  0x59   :  { %84 = vsyncpa [#allocation4], 1 }

</bundles_post_ra>
